<compile_context>
chip_gen: v7x
topology: tpu7x:2x2x1
jax: 0.10.0
libtpu: 0.0.40
codegen_flags: <defaults>
</compile_context>

<pallas_src>
import functools

import jax
import jax.numpy as jnp
from jax.experimental import pallas as pl
from jax.experimental.pallas import tpu as pltpu


def _round_up(x: int, m: int) -> int:
    return (x + m - 1) // m * m


# --------------------------------------------------------------------------
# Kernels
# --------------------------------------------------------------------------

def _lin_actv_kernel_multi_k(x_ref, w_ref, b_ref, o_ref, acc_ref):
    """3-D grid (M, N, K): f32 accumulator, epilogue (bias + tanh) on last K step."""
    k = pl.program_id(2)

    @pl.when(k == 0)
    def _():
        acc_ref[...] = jnp.zeros_like(acc_ref)

    acc_ref[...] += jnp.dot(
        x_ref[...], w_ref[...], preferred_element_type=jnp.float32
    )

    @pl.when(k == pl.num_programs(2) - 1)
    def _():
        y = jnp.tanh(acc_ref[...] + b_ref[...].astype(jnp.float32))
        o_ref[...] = y.astype(o_ref.dtype)


def _lin_actv_kernel_single_k(x_ref, w_ref, b_ref, o_ref):
    """2-D grid (M, N): whole reduction in one MXU pass, no accumulator RMW."""
    y = jnp.dot(x_ref[...], w_ref[...], preferred_element_type=jnp.float32)
    o_ref[...] = jnp.tanh(y + b_ref[...].astype(jnp.float32)).astype(o_ref.dtype)


# --------------------------------------------------------------------------
# One-time weight preparation (outside the per-call hot path)
# --------------------------------------------------------------------------

def prepare_lin_actv_weights(w_t, b, *, block_n=512, block_k=1024, use_bf16=None):
    """Pad (and optionally cast) the transposed weight / bias once.

    w_t: (in_dim, out_dim) f32   (PyTorch nn.Linear weight, transposed)
    b:   (out_dim,) f32
    Returns (w_prep, b_prep) where
      w_prep: (Kp, Np)   f32 or bf16, tile-aligned
      b_prep: (1, Np)    f32, tile-aligned
    """
    K, N = w_t.shape
    if use_bf16 is None:
        # bf16 operands (f32 accumulation) by default for large layers:
        # ~3-4x MXU throughput on v6e/v7x, ~2x on v5e, half the weight HBM bytes.
        use_bf16 = (K * N) >= 512 * 512

    tn = min(block_n, _round_up(N, 128))
    tk = min(block_k, _round_up(K, 128))
    Np = _round_up(N, tn)
    Kp = _round_up(K, tk)

    wp = w_t if (Kp == K and Np == N) else jnp.pad(w_t, ((0, Kp - K), (0, Np - N)))
    if use_bf16:
        wp = wp.astype(jnp.bfloat16)

    b2 = b.reshape(1, N).astype(jnp.float32)  # bias stays f32 (epilogue add)
    bp = b2 if Np == N else jnp.pad(b2, ((0, 0), (0, Np - N)))
    return wp, bp


# --------------------------------------------------------------------------
# Forward pass
# --------------------------------------------------------------------------

@functools.partial(
    jax.jit, static_argnames=("out_dim", "block_m", "block_n", "block_k")
)
def lin_actv(x, w_prep, b_prep, *, out_dim, block_m=1024, block_n=512, block_k=1024):
    """y = tanh(x @ W + b) with prepared (padded / possibly bf16) weights.

    x:      (B, in_dim)  float32
    w_prep: (Kp, Np)     from prepare_lin_actv_weights (same block_n/block_k)
    b_prep: (1, Np)      float32
    out_dim: original out_dim (static) — padded columns are sliced off.
    """
    B, K = x.shape
    Kp, Np = w_prep.shape
    N = out_dim
    assert K <= Kp and N <= Np, "prepared weight does not match x / out_dim"

    # Tile sizes (must be consistent with how the weight was prepared).
    tn = min(block_n, Np)
    tk = min(block_k, Kp)
    assert Np % tn == 0 and Kp % tk == 0, (
        "pass the same block_n/block_k used in prepare_lin_actv_weights"
    )

    use_bf16 = w_prep.dtype == jnp.bfloat16
    m_align = 16 if use_bf16 else 8          # bf16 packs 2 rows / sublane
    tm = min(block_m, _round_up(B, m_align))  # cover the whole batch when it fits
    Mp = _round_up(B, tm)

    gm, gn = Mp // tm, Np // tn
    # v7x has 2 TensorCores: avoid a degenerate (1, 1) parallel grid when we can
    # split N into >= 2 lane-dense blocks.
    if gm == 1 and gn == 1 and Np >= 256:
        tn = (Np // 2) if (Np // 2) % 128 == 0 else 128
        gn = Np // tn

    # Pad the activations only (K-padding contributes 0 to the dot; padded
    # rows/cols are sliced off below — semantics match nn.Linear exactly).
    xp = x if (Mp == B and Kp == K) else jnp.pad(x, ((0, Mp - B), (0, Kp - K)))
    if use_bf16 and xp.dtype != jnp.bfloat16:
        xp = xp.astype(jnp.bfloat16)

    out_dtype = x.dtype
    vmem_limit = 48 * 1024 * 1024  # headroom even on v7x (64 MiB physical VMEM)

    if Kp == tk:
        # Single reduction step: no accumulator, no zero-init, no RMW.
        out = pl.pallas_call(
            _lin_actv_kernel_single_k,
            out_shape=jax.ShapeDtypeStruct((Mp, Np), out_dtype),
            grid_spec=pltpu.PrefetchScalarGridSpec(
                num_scalar_prefetch=0,
                grid=(gm, gn),
                in_specs=[
                    pl.BlockSpec((tm, tk), lambda i, j: (i, 0)),
                    pl.BlockSpec((tk, tn), lambda i, j: (0, j)),
                    pl.BlockSpec((1, tn), lambda i, j: (0, j)),
                ],
                out_specs=pl.BlockSpec((tm, tn), lambda i, j: (i, j)),
            ),
            compiler_params=pltpu.CompilerParams(
                dimension_semantics=("parallel", "parallel"),
                vmem_limit_bytes=vmem_limit,
            ),
        )(xp, w_prep, b_prep)
    else:
        gk = Kp // tk
        out = pl.pallas_call(
            _lin_actv_kernel_multi_k,
            out_shape=jax.ShapeDtypeStruct((Mp, Np), out_dtype),
            grid_spec=pltpu.PrefetchScalarGridSpec(
                num_scalar_prefetch=0,
                grid=(gm, gn, gk),
                in_specs=[
                    pl.BlockSpec((tm, tk), lambda i, j, k: (i, k)),
                    pl.BlockSpec((tk, tn), lambda i, j, k: (k, j)),
                    pl.BlockSpec((1, tn), lambda i, j, k: (0, j)),
                ],
                out_specs=pl.BlockSpec((tm, tn), lambda i, j, k: (i, j)),
                scratch_shapes=[pltpu.VMEM((tm, tn), jnp.float32)],
            ),
            compiler_params=pltpu.CompilerParams(
                dimension_semantics=("parallel", "parallel", "arbitrary"),
                vmem_limit_bytes=vmem_limit,
            ),
        )(xp, w_prep, b_prep)

    return out[:B, :N]


# --------------------------------------------------------------------------
# Parameter init matching nn.Linear defaults (uniform +/- 1/sqrt(in_dim))
# --------------------------------------------------------------------------

def init_lin_actv_params(key, in_dim, out_dim, dtype=jnp.float32):
    kw, kb = jax.random.split(key)
    bound = 1.0 / jnp.sqrt(jnp.float32(in_dim))
    w_pt = jax.random.uniform(kw, (out_dim, in_dim), dtype, -bound, bound)
    b = jax.random.uniform(kb, (out_dim,), dtype, -bound, bound)
    return w_pt.T, b  # kernel uses the transposed (in_dim, out_dim) layout


if __name__ == "__main__":
    root = jax.random.PRNGKey(0)
    k_x, k_p, k_x2, k_p2 = jax.random.split(root, 4)

    # --- Small demo consistent with the module (tiny MLP layer) -------------
    batch, in_dim, out_dim = 8, 32, 16
    x = jax.random.normal(k_x, (batch, in_dim), jnp.float32)
    w_t, b = init_lin_actv_params(k_p, in_dim, out_dim)

    w_prep, b_prep = prepare_lin_actv_weights(w_t, b)      # small layer -> f32
    y = lin_actv(x, w_prep, b_prep, out_dim=out_dim)
    jax.block_until_ready(y)
    y_ref = jnp.tanh(
        jnp.dot(x, w_t, precision=jax.lax.Precision.HIGHEST) + b.reshape(1, -1)
    )
    assert y.shape == (batch, out_dim)
    assert jnp.allclose(y, y_ref, atol=2e-5, rtol=2e-5)

    # --- Non-aligned shapes, multi-K accumulation + N split -----------------
    B2, K2, N2 = 300, 200, 130
    x2 = jax.random.normal(k_x2, (B2, K2), jnp.float32)
    w_t2, b2 = init_lin_actv_params(k_p2, K2, N2)

    # Force several K steps (block_k=128) to exercise the accumulator path.
    w_prep2, b_prep2 = prepare_lin_actv_weights(
        w_t2, b2, block_k=128, use_bf16=False
    )
    y2 = lin_actv(x2, w_prep2, b_prep2, out_dim=N2, block_k=128)
    jax.block_until_ready(y2)
    y2_ref = jnp.tanh(
        jnp.dot(x2, w_t2, precision=jax.lax.Precision.HIGHEST) + b2.reshape(1, -1)
    )
    assert y2.shape == (B2, N2)
    assert jnp.allclose(y2, y2_ref, atol=2e-5, rtol=2e-5)

    # --- bf16-operand path (f32 accumulation) — looser tolerance ------------
    w_prep3, b_prep3 = prepare_lin_actv_weights(w_t2, b2, use_bf16=True)
    y3 = lin_actv(x2, w_prep3, b_prep3, out_dim=N2)
    jax.block_until_ready(y3)
    assert jnp.allclose(y3, y2_ref, atol=2e-2, rtol=2e-2)

    print("KERNEL_OK")
</pallas_src>

<mosaic_0001>
module attributes {stable_mosaic.version = 11 : i64} {
  func.func @_lin_actv_kernel_single_k(%arg0: i32, %arg1: i32, %arg2: memref<8x128xf32, #tpu.memory_space<vmem>>, %arg3: memref<128x128xf32, #tpu.memory_space<vmem>>, %arg4: memref<1x128xf32, #tpu.memory_space<vmem>>, %arg5: memref<8x128xf32, #tpu.memory_space<vmem>>) attributes {dimension_semantics = [#tpu.dimension_semantics<parallel>, #tpu.dimension_semantics<parallel>], iteration_bounds = array<i64: 1, 1>, scalar_prefetch = 0 : i64, scratch_operands = 0 : i64, tpu.core_type = #tpu.core_type<tc>, window_params = [{transform_indices = @transform_0, window_bounds = array<i64: 8, 128>}, {transform_indices = @transform_1, window_bounds = array<i64: 128, 128>}, {transform_indices = @transform_2, window_bounds = array<i64: 1, 128>}, {transform_indices = @transform_3, window_bounds = array<i64: 8, 128>}]} {
    %c0 = arith.constant 0 : index
    %c0_0 = arith.constant 0 : index
    %0 = vector.load %arg2[%c0, %c0_0] : memref<8x128xf32, #tpu.memory_space<vmem>>, vector<8x128xf32>
    %c0_1 = arith.constant 0 : index
    %c0_2 = arith.constant 0 : index
    %1 = vector.load %arg3[%c0_1, %c0_2] : memref<128x128xf32, #tpu.memory_space<vmem>>, vector<128x128xf32>
    %cst = arith.constant dense<0.000000e+00> : vector<8x128xf32>
    %2 = tpu.matmul %0, %1, %cst {dimension_numbers = #tpu.dot_dimension_numbers<[1], [0], [0], [1], [0, 0, 1, 1], [], []>} : vector<8x128xf32>, vector<128x128xf32>, vector<8x128xf32> -> vector<8x128xf32>
    %c0_3 = arith.constant 0 : index
    %c0_4 = arith.constant 0 : index
    %3 = vector.load %arg4[%c0_3, %c0_4] : memref<1x128xf32, #tpu.memory_space<vmem>>, vector<1x128xf32>
    %4 = vector.broadcast %3 : vector<1x128xf32> to vector<8x128xf32>
    %5 = arith.addf %2, %4 : vector<8x128xf32>
    %6 = math.tanh %5 : vector<8x128xf32>
    %c0_5 = arith.constant 0 : index
    %c0_6 = arith.constant 0 : index
    %7 = vector.load %arg5[%c0_5, %c0_6] : memref<8x128xf32, #tpu.memory_space<vmem>>, vector<8x128xf32>
    tpu.vector_store %arg5[%c0_5, %c0_6], %6 {strides = array<i32>} : memref<8x128xf32, #tpu.memory_space<vmem>>, vector<8x128xf32>,
    return
  }
  func.func @transform_0(%arg0: i32, %arg1: i32) -> (i32, i32) {
    %c0_i32 = arith.constant 0 : i32
    %c0_i32_0 = arith.constant 0 : i32
    return %arg0, %c0_i32 : i32, i32
  }
  func.func @transform_1(%arg0: i32, %arg1: i32) -> (i32, i32) {
    %c0_i32 = arith.constant 0 : i32
    %c0_i32_0 = arith.constant 0 : i32
    return %c0_i32, %arg1 : i32, i32
  }
  func.func @transform_2(%arg0: i32, %arg1: i32) -> (i32, i32) {
    %c0_i32 = arith.constant 0 : i32
    %c0_i32_0 = arith.constant 0 : i32
    return %c0_i32, %arg1 : i32, i32
  }
  func.func @transform_3(%arg0: i32, %arg1: i32) -> (i32, i32) {
    %c0_i32 = arith.constant 0 : i32
    return %arg0, %arg1 : i32, i32
  }
}

</mosaic_0001>

<bundles_post_ra>
// kernel: lin_actv.1
= control target key start
LH: loop header
LB: loop body
LE: loop exit
PB: predicated region body
PF: predicated region fallthrough
CT: control target
= control target key end

     0   :  { %8 = vsyncpa [#allocation3], 0  ;;  %s331_s0 = inlined_call_operand.vmem [shape: f32[8,128], index: 0, kind: input, shape index: {}]   ;;  %s332_s1 = inlined_call_operand.hbm [shape: f32[128,128], index: 1, kind: input, shape index: {}]   ;;  %s333_s2 = inlined_call_operand.vmem [shape: f32[1,128], index: 2, kind: input, shape index: {}]   ;;  %s334_s3 = inlined_call_operand.hbm [shape: f32[8,128], index: 3, kind: output, shape index: {}]  }
   0x1   :  { %9 = vsyncpa [#allocation4], 0  ;;  %s274_s12 = smov [#allocation2]   ;;  %s226_s16 = scalar_lea.hbm %s332_s1, 2048 }
   0x2   :  { %s17_s13 = sshll.u32 %s274_s12, 4  ;;  %p227_p0 = scmp.ne.s32.totalorder %s332_s1, %s226_s16  ;;  %s18_s13 = int_to_ptr.vmem [resolvable:$true] %s17_s13 }
   0x3   :  { %p230_p1 = scmp.lt.u32.totalorder %s226_s16, %s332_s1 }
   0x5   :  { %p232_p2 = pnand %p230_p1, %p227_p0 }
   0x7   :  { %235 = shalt.err (!%p232_p2)
}
   0x8   :  { %s236_s21 = scalar_lea.vmem %s18_s13, 2048  ;;  %p241_p4 = scmp.lt.s32.totalorder %s18_s13, %s18_s13 }
   0x9   :  { %p237_p3 = scmp.ne.s32.totalorder %s18_s13, %s236_s21  ;;  %p242_p5 = scmp.lt.s32.totalorder %s236_s21, %s236_s21 }
   0xb   :  { %p243_p6 = por %p242_p5, %p241_p4 }
   0xd   :  { %p244_p7 = pnand %p243_p6, %p237_p3 }
   0xf   :  { %247 = shalt.err (!%p244_p7)
}
  0x10   :  { %s275_s22 = smov 128   ;;  %s276_s23 = smov 8  }
  0x11   :  { %23 = dma.hbm_to_vmem [thread:$0]  %s332_s1, 2048, %s18_s13, [#allocation3], %s275_s22, %s275_s22, %s276_s23  }
  0x12   :  { %270 = dma.done.wait [#allocation3], 2048  }
  0x13   :  { %271 = vsyncadd [#allocation3], 4294965248  ;;  %v277_v0 = vmov 0.0|0.0   ;;  %vm278_vm0 = vmmov 0   ;;  %v279_v1 = vmov 0.0   ;;  %v30_v2 = vld [vmem:[#allocation2] sm:$0xff] }
  0x14   :  { %193 = vmatprep.subr.bf16.mxu0 %v277_v0  ;;  %190 = vmatprep.mubr.msk.f32.mxu0 %vm278_vm0, %v279_v1  ;;  %v31_v3 = vld [vmem:[#allocation2 + $0x8] sm:$0xff]  ;;  %v32_v4 = vld [vmem:[#allocation2 + $0x10] sm:$0xff]  ;;  %v33_v6 = vld [vmem:[#allocation2 + $0x18] sm:$0xff]  ;;  %s280_s29 = smov [#allocation5]  }
  0x15   :  { %v194_v5 = vpack.c.bf16 %v31_v3, %v30_v2  ;;  %v197_v7 = vpack.c.bf16 %v33_v6, %v32_v4  ;;  %v34_v8 = vld [vmem:[#allocation2 + $0x20] sm:$0xff]  ;;  %v35_v9 = vld [vmem:[#allocation2 + $0x28] sm:$0xff]  ;;  %v36_v11 = vld [vmem:[#allocation2 + $0x30] sm:$0xff]  ;;  %s131_s30 = sshll.u32 %s280_s29, 4  ;;  %s132_s30 = int_to_ptr.vmem [resolvable:$true] %s131_s30 }
  0x16   :  { %v200_v10 = vpack.c.bf16 %v35_v9, %v34_v8  ;;  %v37_v12 = vld [vmem:[#allocation2 + $0x38] sm:$0xff]  ;;  %v38_v14 = vld [vmem:[#allocation2 + $0x40] sm:$0xff]  ;;  %v39_v15 = vld [vmem:[#allocation2 + $0x48] sm:$0xff]  ;;  %s248_s4 = scalar_lea.vmem %s132_s30, 128  ;;  %p253_p9 = scmp.lt.s32.totalorder %s132_s30, %s132_s30 }
  0x17   :  { %195 = vmatpush3.bf16.msra.mxu0 %v194_v5  ;;  %v203_v13 = vpack.c.bf16 %v37_v12, %v36_v11  ;;  %v206_v16 = vpack.c.bf16 %v39_v15, %v38_v14  ;;  %v40_v17 = vld [vmem:[#allocation2 + $0x50] sm:$0xff]  ;;  %v41_v18 = vld [vmem:[#allocation2 + $0x58] sm:$0xff]  ;;  %v42_v20 = vld [vmem:[#allocation2 + $0x60] sm:$0xff]  ;;  %p249_p8 = scmp.ne.s32.totalorder %s132_s30, %s248_s4  ;;  %p254_p10 = scmp.lt.s32.totalorder %s248_s4, %s248_s4 }
  0x18   :  { %196 = vmatprep.subr.bf16.mxu0 %v277_v0  ;;  %v209_v19 = vpack.c.bf16 %v41_v18, %v40_v17  ;;  %v43_v21 = vld [vmem:[#allocation2 + $0x68] sm:$0xff]  ;;  %v44_v23 = vld [vmem:[#allocation2 + $0x70] sm:$0xff]  ;;  %v45_v24 = vld [vmem:[#allocation2 + $0x78] sm:$0xff] }
  0x19   :  { %v212_v22 = vpack.c.bf16 %v43_v21, %v42_v20  ;;  %v215_v25 = vpack.c.bf16 %v45_v24, %v44_v23  ;;  %v29_v26 = vld [vmem:[%s331_s0] sm:$0xff]  ;;  %p255_p11 = por %p254_p10, %p253_p9 }
  0x1a   :  { %v140_v27 = vld [vmem:[%s333_s2] ss:$0 sm:$0xff] }
  0x1b   :  { %198 = vmatpush3.bf16.msra.mxu0 %v197_v7  ;;  %p256_p12 = pnand %p255_p11, %p249_p8 }
  0x1c   :  { %199 = vmatprep.subr.bf16.mxu0 %v277_v0 }
  0x1f   :  { %201 = vmatpush3.bf16.msra.mxu0 %v200_v10 }
  0x20   :  { %202 = vmatprep.subr.bf16.mxu0 %v277_v0 }
  0x23   :  { %204 = vmatpush3.bf16.msra.mxu0 %v203_v13 }
  0x24   :  { %205 = vmatprep.subr.bf16.mxu0 %v277_v0 }
  0x27   :  { %207 = vmatpush3.bf16.msra.mxu0 %v206_v16 }
  0x28   :  { %208 = vmatprep.subr.bf16.mxu0 %v277_v0 }
  0x2b   :  { %210 = vmatpush3.bf16.msra.mxu0 %v209_v19 }
  0x2c   :  { %211 = vmatprep.subr.bf16.mxu0 %v277_v0 }
  0x2f   :  { %213 = vmatpush3.bf16.msra.mxu0 %v212_v22 }
  0x30   :  { %214 = vmatprep.subr.bf16.mxu0 %v277_v0 }
  0x33   :  { %216 = vmatpush3.bf16.msra.mxu0 %v215_v25 }
  0x36   :  { %191 = vmatmul.mubr.f32.vlgmr.msra.gmra.mrb[0].mxu0 %v29_v26 }
 0x109   :  { %v119_v28 = vpop.f32.mrb[0].mxu0 }
 0x10a   :  { %v120_v29 = vadd.f32 %v140_v27, %v119_v28  ;;  %v192_v30 = vpop.f32.mrb[1].mxu0 }
 0x10c   :  { %224 = vtanh.f32 %v120_v29 }
 0x116   :  { %v225_v31 = vpop.eup %224 }
 0x117   :  { %124 = vst [vmem:[#allocation5] sm:$0xff] %v225_v31 }
 0x118   :  { %259 = shalt.err (!%p256_p12)
}
 0x119   :  { %s260_s2 = scalar_lea.hbm %s334_s3, 128 }
 0x11a   :  { %p261_p13 = scmp.ne.s32.totalorder %s334_s3, %s260_s2  ;;  %p264_p0 = scmp.lt.u32.totalorder %s260_s2, %s334_s3 }
 0x11c   :  { %p266_p1 = pnand %p264_p0, %p261_p13 }
 0x11e   :  { %269 = shalt.err (!%p266_p1)
}
 0x11f   :  { %134 = dma.vmem_to_hbm [thread:$0]  %s132_s30, 128, %s334_s3, [#allocation4]  }
 0x120   :  { %272 = dma.done.wait [#allocation4], 128  }
 0x121   :  { %273 = vsyncadd [#allocation4], 4294967168 }
 0x122   :  { %138 = vsyncpa [#allocation3], 1 }
 0x123   :  { %139 = vsyncpa [#allocation4], 1 }

</bundles_post_ra>
